<compile_context>
chip_gen: v7x
topology: tpu7x:2x2x1
jax: 0.10.0
libtpu: 0.0.40
codegen_flags: <defaults>
</compile_context>

<pallas_src>
import math

import jax
import jax.numpy as jnp
from jax.experimental import pallas as pl
from jax.experimental.pallas import tpu as pltpu


_LANES = 128
_TILE_BYTES = 4 * 1024 * 1024   # ~4 MiB per input block per grid step
_ACC_ROWS = 128                 # accumulator height: 128 x 128 f32 = 64 KiB


def _tensorcores_per_device():
    """TensorCores per JAX device (2 on v7x-style chips, else 1).

    Conservative: anything not positively identified as a two-TensorCore chip
    falls back to 1, which is always correct (just no cross-core sharding).
    """
    try:
        kind = jax.devices()[0].device_kind.lower()
    except Exception:
        return 1
    if "lite" in kind or "v5e" in kind or "v6e" in kind:
        return 1
    if "v7" in kind or "7x" in kind or "tpu7" in kind:
        return 2
    return 1


def mse_distill_losses(students, teachers):
    """Per-map MSE losses for same-shaped student/teacher feature maps.

    All maps are fused into a single Pallas call (leading map grid axis).
    Returns a (num_maps,) float32 array of mean-squared-error losses.
    """
    assert len(students) == len(teachers) and len(students) >= 1
    shape = students[0].shape
    for s, t in zip(students, teachers):
        assert s.shape == shape and t.shape == shape, "fused maps must share a shape"

    k = len(students)
    n = int(math.prod(shape))

    s_dt = jnp.dtype(students[0].dtype)
    t_dt = jnp.dtype(teachers[0].dtype)

    # Packing-aware sublane granule (8 rows f32, 16 bf16, 32 int8/fp8).
    packing = max(1, 4 // s_dt.itemsize, 4 // t_dt.itemsize)
    row_granule = 8 * packing
    granule = row_granule * _LANES

    aligned = (n // granule) * granule          # prefix streamed by the kernel
    rows = aligned // _LANES

    # Flatten; stacking same-shaped maps costs one copy but buys a single
    # kernel launch for the whole group (k == 1 is a free reshape).
    if k == 1:
        s_flat = jnp.ravel(students[0])[None]
        t_flat = jnp.ravel(teachers[0])[None]
    else:
        s_flat = jnp.stack([jnp.ravel(x) for x in students])
        t_flat = jnp.stack([jnp.ravel(x) for x in teachers])

    # Ragged tail (< granule elements per map) in plain JAX: avoids the
    # whole-tensor pad/copy the kernel path would otherwise require.
    if aligned < n:
        d_tail = (s_flat[:, aligned:].astype(jnp.float32)
                  - t_flat[:, aligned:].astype(jnp.float32))
        tail_sums = jnp.sum(d_tail * d_tail, axis=1)
    else:
        tail_sums = jnp.zeros((k,), jnp.float32)

    if rows == 0:   # tensor smaller than one granule: the tail covers it all
        return tail_sums / jnp.float32(n)

    if aligned < n:
        s2d = s_flat[:, :aligned].reshape(k, rows, _LANES)
        t2d = t_flat[:, :aligned].reshape(k, rows, _LANES)
    else:
        s2d = s_flat.reshape(k, rows, _LANES)
        t2d = t_flat.reshape(k, rows, _LANES)

    # --- tile sizing (byte budget, not a fixed row count) --------------------
    max_itemsize = max(s_dt.itemsize, t_dt.itemsize)
    max_tile_rows = _TILE_BYTES // (_LANES * max_itemsize)  # 8192 f32 / 16384 bf16
    if rows <= _ACC_ROWS:
        tile_rows = rows
        acc_rows = rows
    else:
        tile_rows = min(max_tile_rows, (rows // _ACC_ROWS) * _ACC_ROWS)
        acc_rows = _ACC_ROWS
    chunks = tile_rows // acc_rows

    num_tiles = -(-rows // tile_rows)
    num_shards = _tensorcores_per_device() if num_tiles > 1 else 1
    tiles_per_shard = -(-num_tiles // num_shards)
    # Partial last tile and/or redundant shard tiles -> mask rows in-kernel.
    needs_mask = (num_shards * tiles_per_shard * tile_rows) != rows

    # --- kernel --------------------------------------------------------------
    def kernel(s_ref, t_ref, out_ref, acc_ref):
        c = pl.program_id(0)                 # shard (TensorCore)
        j = pl.program_id(2)                 # tile within shard

        @pl.when(j == 0)
        def _init():
            acc_ref[...] = jnp.zeros_like(acc_ref)

        tile_row0 = (c * tiles_per_shard + j) * tile_rows   # global slab row

        def tile_partial(mask_rows):
            # Fold this tile into an (acc_rows, 128) partial.  The fori_loop
            # carry stays in vregs, so per-chunk work is pure VPU and the
            # VMEM accumulator is touched only once per tile.
            def chunk(ci, acc):
                i0 = pl.multiple_of(ci * acc_rows, acc_rows)
                d = (s_ref[pl.ds(i0, acc_rows), :].astype(jnp.float32)
                     - t_ref[pl.ds(i0, acc_rows), :].astype(jnp.float32))
                sq = d * d
                if mask_rows:
                    rid = jax.lax.broadcasted_iota(
                        jnp.int32, (acc_rows, _LANES), 0)
                    sq = jnp.where(rid + (tile_row0 + i0) < rows, sq,
                                   jnp.float32(0.0))
                return acc + sq

            zero = jnp.zeros((acc_rows, _LANES), jnp.float32)
            if chunks == 1:
                return chunk(0, zero)
            return jax.lax.fori_loop(0, chunks, chunk, zero)

        if needs_mask:
            interior = (tile_row0 + tile_rows) <= rows

            @pl.when(interior)                  # interior tiles: no mask ops
            def _full():
                acc_ref[...] += tile_partial(False)

            @pl.when(jnp.logical_not(interior))  # edge / overhang tile only
            def _edge():
                acc_ref[...] += tile_partial(True)
        else:
            acc_ref[...] += tile_partial(False)

        @pl.when(j == tiles_per_shard - 1)
        def _epilogue():
            # Fold to a lane-dense (8, 128) block with leading-axis (VPU) sums;
            # the final tiny cross-lane reduce happens in the wrapper.
            out_ref[...] = acc_ref[...].reshape(acc_rows // 8, 8, _LANES).sum(axis=0)

    def in_map(c, m, j):
        # Clamp so overhanging virtual tiles re-read the last real block
        # (their rows are fully masked out; the repeat DMA is elided).
        return (m, jnp.minimum(c * tiles_per_shard + j, num_tiles - 1), 0)

    in_spec = pl.BlockSpec((None, tile_rows, _LANES), in_map)
    out_spec = pl.BlockSpec((None, None, 8, _LANES), lambda c, m, j: (c, m, 0, 0))

    if num_shards > 1:   # two-TensorCore chips (v7x): split the row stream
        dim_sems = (getattr(pltpu, "CORE_PARALLEL", "parallel"),
                    getattr(pltpu, "ARBITRARY", "arbitrary"),
                    getattr(pltpu, "ARBITRARY", "arbitrary"))
    else:
        dim_sems = ("arbitrary", "arbitrary", "arbitrary")

    in_bytes = 2 * tile_rows * _LANES * (s_dt.itemsize + t_dt.itemsize)
    vmem_need = in_bytes + acc_rows * _LANES * 4 + 2 * 8 * _LANES * 4
    vmem_limit = int(min(48 * 2 ** 20, max(16 * 2 ** 20, 2 * vmem_need)))

    partials = pl.pallas_call(
        kernel,
        out_shape=jax.ShapeDtypeStruct((num_shards, k, 8, _LANES), jnp.float32),
        grid=(num_shards, k, tiles_per_shard),
        in_specs=[in_spec, in_spec],
        out_specs=out_spec,
        scratch_shapes=[pltpu.VMEM((acc_rows, _LANES), jnp.float32)],
        compiler_params=pltpu.CompilerParams(
            dimension_semantics=dim_sems,
            vmem_limit_bytes=vmem_limit,
        ),
    )(s2d, t2d)

    kernel_sums = jnp.sum(partials, axis=(0, 2, 3))           # (k,)
    return (kernel_sums + tail_sums) / jnp.float32(n)


def mse_distill_loss(student, teacher):
    """Mean squared error over all elements of one student/teacher pair."""
    return mse_distill_losses([student], [teacher])[0]


class BaseDistiller:
    """JAX/Pallas mirror of the PyTorch BaseDistiller base class."""

    def __call__(self, student_outputs, teacher_outputs):
        return self.forward(student_outputs, teacher_outputs)

    def forward(self, student_outputs, teacher_outputs):
        losses = self.distill(student_outputs, teacher_outputs)
        return losses

    def distill(self, student_outputs, teacher_outputs, **kwargs):
        # The PyTorch base class has no compute here (raises); concrete
        # distillation losses are provided by subclasses (see MSEDistiller).
        raise NotImplementedError("")


class MSEDistiller(BaseDistiller):
    """Concrete distiller: per-feature-map MSE loss via a fused Pallas kernel."""

    def distill(self, student_outputs, teacher_outputs, **kwargs):
        if not isinstance(student_outputs, (list, tuple)):
            student_outputs = [student_outputs]
            teacher_outputs = [teacher_outputs]
        assert len(student_outputs) == len(teacher_outputs)

        # Group same-shape/dtype maps so each group is one pallas_call
        # (one launch + pipeline warm-up amortized over the whole group).
        groups = {}
        for idx, (s, t) in enumerate(zip(student_outputs, teacher_outputs)):
            assert s.shape == t.shape, "student/teacher shapes must match"
            key = (tuple(s.shape), str(jnp.dtype(s.dtype)), str(jnp.dtype(t.dtype)))
            groups.setdefault(key, []).append((idx, s, t))
        # TODO(synk): also fuse *different*-shaped maps into one call by
        # concatenating lane slabs with scalar-prefetched per-map row offsets.

        losses = {}
        for items in groups.values():
            idxs = [i for i, _, _ in items]
            group_losses = mse_distill_losses([s for _, s, _ in items],
                                              [t for _, _, t in items])
            for pos, i in enumerate(idxs):
                losses[f"loss_distill_{i}"] = group_losses[pos]
        return losses


if __name__ == "__main__":
    key = jax.random.PRNGKey(0)
    k_all = jax.random.split(key, 10)

    def _check(got, s, t, rtol=1e-4, atol=1e-6):
        ref = jnp.mean((s.astype(jnp.float32) - t.astype(jnp.float32)) ** 2)
        assert jnp.allclose(got, ref, rtol=rtol, atol=atol), (got, ref)

    distiller = MSEDistiller()

    # 1) Small NCHW feature map: batch=2, channels=4, spatial=16x16.
    student = jax.random.normal(k_all[0], (2, 4, 16, 16), dtype=jnp.float32)
    teacher = jax.random.normal(k_all[1], (2, 4, 16, 16), dtype=jnp.float32)
    losses = jax.block_until_ready(distiller(student, teacher))
    _check(losses["loss_distill_0"], student, teacher)

    # 2) Three same-shaped maps fused into a single pallas_call.
    studs = [jax.random.normal(k_all[2 + i], (2, 4, 16, 16), dtype=jnp.float32)
             for i in range(3)]
    teachs = [jax.random.normal(k_all[5 + i], (2, 4, 16, 16), dtype=jnp.float32)
              for i in range(3)]
    multi = jax.block_until_ready(distiller(studs, teachs))
    for i in range(3):
        _check(multi[f"loss_distill_{i}"], studs[i], teachs[i])

    # 3) Unaligned element count: exercises the plain-JAX ragged tail and the
    #    masked partial-last-tile path (264 full lane rows + 77 tail elems).
    n_odd = 264 * 128 + 77
    s_odd = jax.random.normal(k_all[8], (n_odd,), dtype=jnp.float32)
    t_odd = jax.random.normal(k_all[9], (n_odd,), dtype=jnp.float32)
    odd = jax.block_until_ready(distiller(s_odd, t_odd))
    _check(odd["loss_distill_0"], s_odd, t_odd)

    print("KERNEL_OK")
</pallas_src>

<mosaic_0001>
module attributes {stable_mosaic.version = 11 : i64} {
  func.func @kernel(%arg0: i32, %arg1: i32, %arg2: i32, %arg3: memref<1x16x128xf32, #tpu.memory_space<vmem>>, %arg4: memref<1x16x128xf32, #tpu.memory_space<vmem>>, %arg5: memref<1x1x8x128xf32, #tpu.memory_space<vmem>>, %arg6: memref<16x128xf32, #tpu.memory_space<vmem>>) attributes {dimension_semantics = [#tpu.dimension_semantics<arbitrary>, #tpu.dimension_semantics<arbitrary>, #tpu.dimension_semantics<arbitrary>], iteration_bounds = array<i64: 1, 1, 1>, scalar_prefetch = 0 : i64, scratch_operands = 1 : i64, tpu.core_type = #tpu.core_type<tc>, window_params = [{transform_indices = @transform_0, window_bounds = array<i64: 1, 16, 128>}, {transform_indices = @transform_1, window_bounds = array<i64: 1, 16, 128>}, {transform_indices = @transform_2, window_bounds = array<i64: 1, 1, 8, 128>}]} {
    %c0_i32 = arith.constant 0 : i32
    %0 = arith.cmpi eq, %arg2, %c0_i32 : i32
    %1 = arith.extui %0 : i1 to i32
    %c0_i32_0 = arith.constant 0 : i32
    %2 = arith.cmpi ne, %1, %c0_i32_0 : i32
    scf.if %2 {
      %cst_11 = arith.constant 0.000000e+00 : f32
      %20 = vector.broadcast %cst_11 : f32 to vector<16x128xf32>
      %c0_12 = arith.constant 0 : index
      %c0_13 = arith.constant 0 : index
      %21 = vector.load %arg6[%c0_12, %c0_13] : memref<16x128xf32, #tpu.memory_space<vmem>>, vector<16x128xf32>
      tpu.vector_store %arg6[%c0_12, %c0_13], %20 {strides = array<i32>} : memref<16x128xf32, #tpu.memory_space<vmem>>, vector<16x128xf32>,
    } else {
    }
    %c0 = arith.constant 0 : index
    %c0_1 = arith.constant 0 : index
    %3 = vector.load %arg6[%c0, %c0_1] : memref<16x128xf32, #tpu.memory_space<vmem>>, vector<16x128xf32>
    %cst = arith.constant 0.000000e+00 : f32
    %4 = vector.broadcast %cst : f32 to vector<16x128xf32>
    %c0_i32_2 = arith.constant 0 : i32
    %5 = tpu.assume_multiple %c0_i32_2, 16 : i32
    %c0_3 = arith.constant 0 : index
    %6 = arith.index_cast %5 : i32 to index
    %c0_4 = arith.constant 0 : index
    %7 = vector.load %arg3[%c0_3, %6, %c0_4] : memref<1x16x128xf32, #tpu.memory_space<vmem>>, vector<1x16x128xf32>
    %8 = vector.shape_cast %7 : vector<1x16x128xf32> to vector<16x128xf32>
    %c0_5 = arith.constant 0 : index
    %9 = arith.index_cast %5 : i32 to index
    %c0_6 = arith.constant 0 : index
    %10 = vector.load %arg4[%c0_5, %9, %c0_6] : memref<1x16x128xf32, #tpu.memory_space<vmem>>, vector<1x16x128xf32>
    %11 = vector.shape_cast %10 : vector<1x16x128xf32> to vector<16x128xf32>
    %12 = arith.subf %8, %11 : vector<16x128xf32>
    %13 = arith.mulf %12, %12 : vector<16x128xf32>
    %14 = arith.addf %4, %13 : vector<16x128xf32>
    %15 = arith.addf %3, %14 : vector<16x128xf32>
    %c0_7 = arith.constant 0 : index
    %c0_8 = arith.constant 0 : index
    %16 = vector.load %arg6[%c0_7, %c0_8] : memref<16x128xf32, #tpu.memory_space<vmem>>, vector<16x128xf32>
    tpu.vector_store %arg6[%c0_7, %c0_8], %15 {strides = array<i32>} : memref<16x128xf32, #tpu.memory_space<vmem>>, vector<16x128xf32>,
    %c0_i32_9 = arith.constant 0 : i32
    %17 = arith.cmpi eq, %arg2, %c0_i32_9 : i32
    %18 = arith.extui %17 : i1 to i32
    %c0_i32_10 = arith.constant 0 : i32
    %19 = arith.cmpi ne, %18, %c0_i32_10 : i32
    scf.if %19 {
      %c0_11 = arith.constant 0 : index
      %c0_12 = arith.constant 0 : index
      %20 = vector.load %arg6[%c0_11, %c0_12] : memref<16x128xf32, #tpu.memory_space<vmem>>, vector<16x128xf32>
      %21 = vector.shape_cast %20 : vector<16x128xf32> to vector<2x8x128xf32>
      %cst_13 = arith.constant dense<0.000000e+00> : vector<8x128xf32>
      %22 = vector.multi_reduction <add>, %21, %cst_13 [0] : vector<2x8x128xf32> to vector<8x128xf32>
      %c0_14 = arith.constant 0 : index
      %c0_15 = arith.constant 0 : index
      %c0_16 = arith.constant 0 : index
      %c0_17 = arith.constant 0 : index
      %23 = vector.load %arg5[%c0_14, %c0_15, %c0_16, %c0_17] : memref<1x1x8x128xf32, #tpu.memory_space<vmem>>, vector<1x1x8x128xf32>
      %24 = vector.shape_cast %23 : vector<1x1x8x128xf32> to vector<8x128xf32>
      %25 = vector.shape_cast %22 : vector<8x128xf32> to vector<1x1x8x128xf32>
      tpu.vector_store %arg5[%c0_14, %c0_15, %c0_16, %c0_17], %25 {strides = array<i32>} : memref<1x1x8x128xf32, #tpu.memory_space<vmem>>, vector<1x1x8x128xf32>,
    } else {
    }
    return
  }
  func.func @transform_0(%arg0: i32, %arg1: i32, %arg2: i32) -> (i32, i32, i32) {
    %c1_i32 = arith.constant 1 : i32
    %0 = arith.muli %arg0, %c1_i32 : i32
    %1 = arith.addi %0, %arg2 : i32
    %c0_i32 = arith.constant 0 : i32
    %2 = arith.minsi %1, %c0_i32 : i32
    %c0_i32_0 = arith.constant 0 : i32
    %c0_i32_1 = arith.constant 0 : i32
    return %arg1, %2, %c0_i32_0 : i32, i32, i32
  }
  func.func @transform_1(%arg0: i32, %arg1: i32, %arg2: i32) -> (i32, i32, i32) {
    %c1_i32 = arith.constant 1 : i32
    %0 = arith.muli %arg0, %c1_i32 : i32
    %1 = arith.addi %0, %arg2 : i32
    %c0_i32 = arith.constant 0 : i32
    %2 = arith.minsi %1, %c0_i32 : i32
    %c0_i32_0 = arith.constant 0 : i32
    %c0_i32_1 = arith.constant 0 : i32
    return %arg1, %2, %c0_i32_0 : i32, i32, i32
  }
  func.func @transform_2(%arg0: i32, %arg1: i32, %arg2: i32) -> (i32, i32, i32, i32) {
    %c0_i32 = arith.constant 0 : i32
    %c0_i32_0 = arith.constant 0 : i32
    %c0_i32_1 = arith.constant 0 : i32
    return %arg0, %arg1, %c0_i32, %c0_i32_0 : i32, i32, i32, i32
  }
}

</mosaic_0001>

<bundles_post_ra>
// kernel: tpu_custom_call.1
= control target key start
LH: loop header
LB: loop body
LE: loop exit
PB: predicated region body
PF: predicated region fallthrough
CT: control target
= control target key end

     0   :  { %7 = vsyncpa [#allocation4], 0  ;;  %s242_s0 = inlined_call_operand.hbm [shape: f32[1,16,128], index: 0, kind: input, shape index: {}]   ;;  %s243_s1 = inlined_call_operand.hbm [shape: f32[1,16,128], index: 1, kind: input, shape index: {}]   ;;  %s244_s2 = inlined_call_operand.hbm [shape: f32[1,1,8,128], index: 2, kind: output, shape index: {}]  }
   0x1   :  { %8 = vsyncpa [#allocation7], 0 }
   0x2   :  { %9 = vsyncpa [#allocation5], 0  ;;  %s186_s9 = smov [#allocation3]   ;;  %s114_s13 = scalar_lea.hbm %s242_s0, 256 }
   0x3   :  { %s21_s10 = sshll.u32 %s186_s9, 4  ;;  %p115_p0 = scmp.ne.s32.totalorder %s242_s0, %s114_s13  ;;  %s22_s10 = int_to_ptr.vmem [resolvable:$true] %s21_s10 }
   0x4   :  { %p118_p1 = scmp.lt.u32.totalorder %s114_s13, %s242_s0 }
   0x6   :  { %p120_p2 = pnand %p118_p1, %p115_p0 }
   0x8   :  { %123 = shalt.err (!%p120_p2)
}
   0x9   :  { %s124_s18 = scalar_lea.vmem %s22_s10, 256  ;;  %p129_p4 = scmp.lt.s32.totalorder %s22_s10, %s22_s10 }
   0xa   :  { %p125_p3 = scmp.ne.s32.totalorder %s22_s10, %s124_s18  ;;  %p130_p5 = scmp.lt.s32.totalorder %s124_s18, %s124_s18 }
   0xc   :  { %p131_p6 = por %p130_p5, %p129_p4 }
   0xe   :  { %p132_p7 = pnand %p131_p6, %p125_p3 }
  0x10   :  { %135 = shalt.err (!%p132_p7)
}
  0x11   :  { %s187_s19 = smov 128   ;;  %s188_s20 = smov 8  }
  0x12   :  { %27 = dma.hbm_to_vmem [thread:$0]  %s242_s0, 256, %s22_s10, [#allocation4], %s187_s19, %s187_s19, %s188_s20  }
  0x13   :  { %s189_s23 = smov [#allocation6]   ;;  %s136_s27 = scalar_lea.hbm %s243_s1, 256 }
  0x14   :  { %s39_s24 = sshll.u32 %s189_s23, 4  ;;  %p137_p8 = scmp.ne.s32.totalorder %s243_s1, %s136_s27  ;;  %s40_s24 = int_to_ptr.vmem [resolvable:$true] %s39_s24 }
  0x15   :  { %p140_p9 = scmp.lt.u32.totalorder %s136_s27, %s243_s1 }
  0x17   :  { %p142_p10 = pnand %p140_p9, %p137_p8 }
  0x19   :  { %145 = shalt.err (!%p142_p10)
}
  0x1a   :  { %s146_s4 = scalar_lea.vmem %s40_s24, 256  ;;  %p151_p12 = scmp.lt.s32.totalorder %s40_s24, %s40_s24 }
  0x1b   :  { %p147_p11 = scmp.ne.s32.totalorder %s40_s24, %s146_s4  ;;  %p152_p13 = scmp.lt.s32.totalorder %s146_s4, %s146_s4 }
  0x1d   :  { %p153_p0 = por %p152_p13, %p151_p12 }
  0x1f   :  { %p154_p1 = pnand %p153_p0, %p147_p11 }
  0x21   :  { %157 = shalt.err (!%p154_p1)
}
  0x22   :  { %45 = dma.hbm_to_vmem [thread:$0]  %s243_s1, 256, %s40_s24, [#allocation7], %s187_s19, %s187_s19, %s188_s20  }
  0x23   :  { %180 = dma.done.wait [#allocation4], 256  }
  0x24   :  { %181 = vsyncadd [#allocation4], 4294967040 }
  0x25   :  { %182 = dma.done.wait [#allocation7], 256  }
  0x26   :  { %183 = vsyncadd [#allocation7], 4294967040  ;;  %v68_v0 = vld [vmem:[#allocation3] sm:$0xff]  ;;  %v69_v1 = vld [vmem:[#allocation3 + $0x8] sm:$0xff]  ;;  %s190_s6 = smov [#allocation8]  }
  0x27   :  { %v70_v2 = vld [vmem:[#allocation6] sm:$0xff]  ;;  %v71_v3 = vld [vmem:[#allocation6 + $0x8] sm:$0xff]  ;;  %s95_s7 = sshll.u32 %s190_s6, 4  ;;  %s96_s7 = int_to_ptr.vmem [resolvable:$true] %s95_s7 }
  0x28   :  { %v72_v4 = vsub.f32 %v68_v0, %v70_v2  ;;  %v73_v5 = vsub.f32 %v69_v1, %v71_v3  ;;  %s158_s8 = scalar_lea.vmem %s96_s7, 128  ;;  %p163_p3 = scmp.lt.s32.totalorder %s96_s7, %s96_s7 }
  0x29   :  { %p159_p2 = scmp.ne.s32.totalorder %s96_s7, %s158_s8  ;;  %p164_p4 = scmp.lt.s32.totalorder %s158_s8, %s158_s8 }
  0x2a   :  { %v74_v6 = vmul.f32 %v72_v4, %v72_v4  ;;  %v75_v7 = vmul.f32 %v73_v5, %v73_v5 }
  0x2b   :  { %p165_p5 = por %p164_p4, %p163_p3 }
  0x2c   :  { %v87_v8 = vadd.f32 %v75_v7, %v74_v6 }
  0x2d   :  { %p166_p6 = pnand %p165_p5, %p159_p2 }
  0x2e   :  { %88 = vst [vmem:[#allocation8] sm:$0xff] %v87_v8 }
  0x2f   :  { %169 = shalt.err (!%p166_p6)
}
  0x30   :  { %s170_s10 = scalar_lea.hbm %s244_s2, 128 }
  0x31   :  { %p171_p7 = scmp.ne.s32.totalorder %s244_s2, %s170_s10  ;;  %p174_p8 = scmp.lt.u32.totalorder %s170_s10, %s244_s2 }
  0x33   :  { %p176_p9 = pnand %p174_p8, %p171_p7 }
  0x35   :  { %179 = shalt.err (!%p176_p9)
}
  0x36   :  { %98 = dma.vmem_to_hbm [thread:$0]  %s96_s7, 128, %s244_s2, [#allocation5]  }
  0x37   :  { %184 = dma.done.wait [#allocation5], 128  }
  0x38   :  { %185 = vsyncadd [#allocation5], 4294967168 }
  0x39   :  { %102 = vsyncpa [#allocation4], 1 }
  0x3a   :  { %103 = vsyncpa [#allocation7], 1 }
  0x3b   :  { %104 = vsyncpa [#allocation5], 1 }

</bundles_post_ra>
